<compile_context>
chip_gen: v5e
topology: v5e:2x2
jax: 0.10.0
libtpu: 0.0.40
codegen_flags: <defaults>
</compile_context>

<pallas_src>
import jax
import jax.numpy as jnp
from jax.experimental import pallas as pl
from jax.experimental.pallas import tpu as pltpu

LANE = 128     # f32 lane width
SUBLANE = 8    # f32 sublane tile


def _round_up(n, m):
    return ((n + m - 1) // m) * m


def mlp_kernel(x_ref, w1_ref, w23_ref, w4_ref, b1_ref, b23_ref, b4_ref, o_ref):
    """One batch tile of the full forward pass, entirely in VMEM.

    x_ref: (tile_b, Din)   w1_ref: (Din, H)   w23_ref: (2, H, H)   w4_ref: (H, C)
    b1_ref: (1, H)         b23_ref: (2, H)    b4_ref: (1, C)       o_ref: (tile_b, C)
    Padded lanes/rows are zero, so they stay zero through every layer
    (tanh(0) == 0) and never contaminate the real outputs.
    """
    h = jnp.tanh(
        jnp.dot(x_ref[...], w1_ref[...], preferred_element_type=jnp.float32)
        + b1_ref[...])
    # TODO(synk): for very large tile_b, split the tile in two and interleave
    # the two halves so tanh (EUP) overlaps the next matmul (MXU).
    for layer in range(2):
        h = jnp.tanh(
            jnp.dot(h, w23_ref[layer], preferred_element_type=jnp.float32)
            + b23_ref[layer:layer + 1, :])
    out = jnp.dot(h, w4_ref[...], preferred_element_type=jnp.float32) + b4_ref[...]
    o_ref[...] = out.astype(o_ref.dtype)


def neural_network_forward(x, params, *, tile_b=None):
    """x: (B, input_size) float32. params: logical (in, out) weights, (1, out) biases."""
    B, input_size = x.shape
    hidden_size = params["w1"].shape[1]
    num_classes = params["w4"].shape[1]

    # Per-layer lane-dense padding (NOT a common max width).
    Din = _round_up(input_size, LANE)
    H = _round_up(hidden_size, LANE)
    C = _round_up(num_classes, LANE)

    def pad_w(w, fi_pad, fo_pad):
        fi, fo = w.shape
        return jnp.pad(w, ((0, fi_pad - fi), (0, fo_pad - fo)))

    def pad_b(b, fo_pad):
        b = b.reshape(1, -1)
        return jnp.pad(b, ((0, 0), (0, fo_pad - b.shape[-1])))

    # NOTE: if params are static across calls, hoist this packing out of the
    # hot path (it is cheap, but it shows up at tiny batch sizes).
    w1 = pad_w(params["w1"], Din, H)
    w23 = jnp.stack([pad_w(params["w2"], H, H), pad_w(params["w3"], H, H)], axis=0)
    w4 = pad_w(params["w4"], H, C)
    b1 = pad_b(params["b1"], H)
    b23 = jnp.concatenate([pad_b(params["b2"], H), pad_b(params["b3"], H)], axis=0)
    b4 = pad_b(params["b4"], C)

    # Batch tiling: multiple of 8 sublanes; >=2 parallel tiles once B > 16 so
    # both v7x TensorCores get work; tiles up to 256 rows to fill the v6e/v7x
    # 256x256 MXU; large batches pipeline in 256-row tiles.
    if tile_b is None:
        if B <= 16:
            tile_b = B
        elif B <= 512:
            tile_b = pl.cdiv(B, 2)
        else:
            tile_b = 256
    tile_b = _round_up(max(1, min(tile_b, B)), SUBLANE)
    B_pad = _round_up(B, tile_b)
    grid = (B_pad // tile_b,)

    x_pad = jnp.pad(x, ((0, B_pad - B), (0, Din - input_size)))

    # VMEM budget: single-buffered weights/biases + double-buffered x/out tiles
    # + activation headroom.  Guard against slabs that cannot fit (would need
    # the layer-streaming variant).
    weight_bytes = 4 * (Din * H + 2 * H * H + H * C)
    bias_bytes = 4 * (3 * H + C)
    io_bytes = 4 * 2 * (tile_b * Din + tile_b * C)          # double-buffered
    act_bytes = 4 * 2 * tile_b * H                          # intermediate h headroom
    assert weight_bytes + bias_bytes <= (48 << 20), (
        "resident weights exceed VMEM budget; "
        "TODO(synk): stream one layer per grid step for this size")
    vmem_limit = min(
        int((weight_bytes + bias_bytes + io_bytes + act_bytes) * 1.25) + (8 << 20),
        100 << 20)

    cost = pl.CostEstimate(
        flops=2 * B_pad * (Din * H + 2 * H * H + H * C),
        transcendentals=3 * B_pad * H,
        bytes_accessed=weight_bytes + bias_bytes + 4 * B_pad * (Din + C),
    )

    resident = dict(pipeline_mode=pl.Buffered(1))   # never re-fetched across grid steps

    out_padded = pl.pallas_call(
        mlp_kernel,
        out_shape=jax.ShapeDtypeStruct((B_pad, C), jnp.float32),
        grid_spec=pltpu.PrefetchScalarGridSpec(
            num_scalar_prefetch=0,
            grid=grid,
            in_specs=[
                pl.BlockSpec((tile_b, Din), lambda i: (i, 0)),           # x: batch-tiled
                pl.BlockSpec((Din, H), lambda i: (0, 0), **resident),    # W1
                pl.BlockSpec((2, H, H), lambda i: (0, 0, 0), **resident),  # W2, W3
                pl.BlockSpec((H, C), lambda i: (0, 0), **resident),      # W4
                pl.BlockSpec((1, H), lambda i: (0, 0), **resident),      # b1
                pl.BlockSpec((2, H), lambda i: (0, 0), **resident),      # b2, b3
                pl.BlockSpec((1, C), lambda i: (0, 0), **resident),      # b4
            ],
            out_specs=pl.BlockSpec((tile_b, C), lambda i: (i, 0)),
        ),
        compiler_params=pltpu.CompilerParams(
            dimension_semantics=("parallel",),
            vmem_limit_bytes=vmem_limit),
        cost_estimate=cost,
    )(x_pad, w1, w23, w4, b1, b23, b4)

    # Strip batch/lane padding back to the logical output.
    return out_padded[:B, :num_classes]


def init_params(key, input_size, hidden_size, num_classes):
    """Deterministic init mirroring nn.Linear; weights stored transposed (in, out)."""
    dims = [(input_size, hidden_size),
            (hidden_size, hidden_size),
            (hidden_size, hidden_size),
            (hidden_size, num_classes)]
    params = {}
    for idx, (fan_in, fan_out) in enumerate(dims, start=1):
        key, kw, kb = jax.random.split(key, 3)
        bound = 1.0 / jnp.sqrt(fan_in)
        params[f"w{idx}"] = jax.random.uniform(
            kw, (fan_in, fan_out), jnp.float32, -bound, bound)
        params[f"b{idx}"] = jax.random.uniform(
            kb, (1, fan_out), jnp.float32, -bound, bound)
    return params


def reference_forward(x, params):
    h = jnp.tanh(x @ params["w1"] + params["b1"])
    h = jnp.tanh(h @ params["w2"] + params["b2"])
    h = jnp.tanh(h @ params["w3"] + params["b3"])
    return h @ params["w4"] + params["b4"]


if __name__ == "__main__":
    key = jax.random.PRNGKey(0)
    batch, input_size, hidden_size, num_classes = 8, 32, 64, 16

    key, kx, kp = jax.random.split(key, 3)
    x = jax.random.normal(kx, (batch, input_size), jnp.float32)
    params = init_params(kp, input_size, hidden_size, num_classes)

    out = jax.block_until_ready(neural_network_forward(x, params))
    ref = reference_forward(x, params)

    assert out.shape == (batch, num_classes)
    assert jnp.allclose(out, ref, atol=1e-5, rtol=1e-5)
    print("KERNEL_OK")
</pallas_src>

<mosaic_0001>
module attributes {stable_mosaic.version = 11 : i64} {
  func.func @mlp_kernel(%arg0: i32, %arg1: memref<8x128xf32, #tpu.memory_space<vmem>>, %arg2: memref<128x128xf32, #tpu.memory_space<vmem>>, %arg3: memref<2x128x128xf32, #tpu.memory_space<vmem>>, %arg4: memref<128x128xf32, #tpu.memory_space<vmem>>, %arg5: memref<1x128xf32, #tpu.memory_space<vmem>>, %arg6: memref<2x128xf32, #tpu.memory_space<vmem>>, %arg7: memref<1x128xf32, #tpu.memory_space<vmem>>, %arg8: memref<8x128xf32, #tpu.memory_space<vmem>>) attributes {dimension_semantics = [#tpu.dimension_semantics<parallel>], iteration_bounds = array<i64: 1>, scalar_prefetch = 0 : i64, scratch_operands = 0 : i64, tpu.core_type = #tpu.core_type<tc>, window_params = [{transform_indices = @transform_0, window_bounds = array<i64: 8, 128>}, {pipeline_mode = #tpu.pipeline_mode<synchronous>, transform_indices = @transform_1, window_bounds = array<i64: 128, 128>}, {pipeline_mode = #tpu.pipeline_mode<synchronous>, transform_indices = @transform_2, window_bounds = array<i64: 2, 128, 128>}, {pipeline_mode = #tpu.pipeline_mode<synchronous>, transform_indices = @transform_3, window_bounds = array<i64: 128, 128>}, {pipeline_mode = #tpu.pipeline_mode<synchronous>, transform_indices = @transform_4, window_bounds = array<i64: 1, 128>}, {pipeline_mode = #tpu.pipeline_mode<synchronous>, transform_indices = @transform_5, window_bounds = array<i64: 2, 128>}, {pipeline_mode = #tpu.pipeline_mode<synchronous>, transform_indices = @transform_6, window_bounds = array<i64: 1, 128>}, {transform_indices = @transform_7, window_bounds = array<i64: 8, 128>}]} {
    %c0 = arith.constant 0 : index
    %c0_0 = arith.constant 0 : index
    %0 = vector.load %arg1[%c0, %c0_0] : memref<8x128xf32, #tpu.memory_space<vmem>>, vector<8x128xf32>
    %c0_1 = arith.constant 0 : index
    %c0_2 = arith.constant 0 : index
    %1 = vector.load %arg2[%c0_1, %c0_2] : memref<128x128xf32, #tpu.memory_space<vmem>>, vector<128x128xf32>
    %cst = arith.constant dense<0.000000e+00> : vector<8x128xf32>
    %2 = tpu.matmul %0, %1, %cst {dimension_numbers = #tpu.dot_dimension_numbers<[1], [0], [0], [1], [0, 0, 1, 1], [], []>} : vector<8x128xf32>, vector<128x128xf32>, vector<8x128xf32> -> vector<8x128xf32>
    %c0_3 = arith.constant 0 : index
    %c0_4 = arith.constant 0 : index
    %3 = vector.load %arg5[%c0_3, %c0_4] : memref<1x128xf32, #tpu.memory_space<vmem>>, vector<1x128xf32>
    %4 = vector.broadcast %3 : vector<1x128xf32> to vector<8x128xf32>
    %5 = arith.addf %2, %4 : vector<8x128xf32>
    %6 = math.tanh %5 : vector<8x128xf32>
    %c0_5 = arith.constant 0 : index
    %c0_6 = arith.constant 0 : index
    %c0_7 = arith.constant 0 : index
    %7 = vector.load %arg3[%c0_5, %c0_6, %c0_7] : memref<2x128x128xf32, #tpu.memory_space<vmem>>, vector<1x128x128xf32>
    %8 = vector.shape_cast %7 : vector<1x128x128xf32> to vector<128x128xf32>
    %cst_8 = arith.constant dense<0.000000e+00> : vector<8x128xf32>
    %9 = tpu.matmul %6, %8, %cst_8 {dimension_numbers = #tpu.dot_dimension_numbers<[1], [0], [0], [1], [0, 0, 1, 1], [], []>} : vector<8x128xf32>, vector<128x128xf32>, vector<8x128xf32> -> vector<8x128xf32>
    %c0_9 = arith.constant 0 : index
    %c0_10 = arith.constant 0 : index
    %10 = vector.load %arg6[%c0_9, %c0_10] : memref<2x128xf32, #tpu.memory_space<vmem>>, vector<1x128xf32>
    %11 = vector.broadcast %10 : vector<1x128xf32> to vector<8x128xf32>
    %12 = arith.addf %9, %11 : vector<8x128xf32>
    %13 = math.tanh %12 : vector<8x128xf32>
    %c1 = arith.constant 1 : index
    %c0_11 = arith.constant 0 : index
    %c0_12 = arith.constant 0 : index
    %14 = vector.load %arg3[%c1, %c0_11, %c0_12] : memref<2x128x128xf32, #tpu.memory_space<vmem>>, vector<1x128x128xf32>
    %15 = vector.shape_cast %14 : vector<1x128x128xf32> to vector<128x128xf32>
    %cst_13 = arith.constant dense<0.000000e+00> : vector<8x128xf32>
    %16 = tpu.matmul %13, %15, %cst_13 {dimension_numbers = #tpu.dot_dimension_numbers<[1], [0], [0], [1], [0, 0, 1, 1], [], []>} : vector<8x128xf32>, vector<128x128xf32>, vector<8x128xf32> -> vector<8x128xf32>
    %c1_14 = arith.constant 1 : index
    %c0_15 = arith.constant 0 : index
    %17 = vector.load %arg6[%c1_14, %c0_15] : memref<2x128xf32, #tpu.memory_space<vmem>>, vector<1x128xf32>
    %18 = vector.broadcast %17 : vector<1x128xf32> to vector<8x128xf32>
    %19 = arith.addf %16, %18 : vector<8x128xf32>
    %20 = math.tanh %19 : vector<8x128xf32>
    %c0_16 = arith.constant 0 : index
    %c0_17 = arith.constant 0 : index
    %21 = vector.load %arg4[%c0_16, %c0_17] : memref<128x128xf32, #tpu.memory_space<vmem>>, vector<128x128xf32>
    %cst_18 = arith.constant dense<0.000000e+00> : vector<8x128xf32>
    %22 = tpu.matmul %20, %21, %cst_18 {dimension_numbers = #tpu.dot_dimension_numbers<[1], [0], [0], [1], [0, 0, 1, 1], [], []>} : vector<8x128xf32>, vector<128x128xf32>, vector<8x128xf32> -> vector<8x128xf32>
    %c0_19 = arith.constant 0 : index
    %c0_20 = arith.constant 0 : index
    %23 = vector.load %arg7[%c0_19, %c0_20] : memref<1x128xf32, #tpu.memory_space<vmem>>, vector<1x128xf32>
    %24 = vector.broadcast %23 : vector<1x128xf32> to vector<8x128xf32>
    %25 = arith.addf %22, %24 : vector<8x128xf32>
    %c0_21 = arith.constant 0 : index
    %c0_22 = arith.constant 0 : index
    %26 = vector.load %arg8[%c0_21, %c0_22] : memref<8x128xf32, #tpu.memory_space<vmem>>, vector<8x128xf32>
    tpu.vector_store %arg8[%c0_21, %c0_22], %25 {strides = array<i32>} : memref<8x128xf32, #tpu.memory_space<vmem>>, vector<8x128xf32>,
    return
  }
  func.func @transform_0(%arg0: i32) -> (i32, i32) {
    %c0_i32 = arith.constant 0 : i32
    %c0_i32_0 = arith.constant 0 : i32
    return %arg0, %c0_i32 : i32, i32
  }
  func.func @transform_1(%arg0: i32) -> (i32, i32) {
    %c0_i32 = arith.constant 0 : i32
    %c0_i32_0 = arith.constant 0 : i32
    %c0_i32_1 = arith.constant 0 : i32
    return %c0_i32, %c0_i32_0 : i32, i32
  }
  func.func @transform_2(%arg0: i32) -> (i32, i32, i32) {
    %c0_i32 = arith.constant 0 : i32
    %c0_i32_0 = arith.constant 0 : i32
    %c0_i32_1 = arith.constant 0 : i32
    %c0_i32_2 = arith.constant 0 : i32
    return %c0_i32, %c0_i32_0, %c0_i32_1 : i32, i32, i32
  }
  func.func @transform_3(%arg0: i32) -> (i32, i32) {
    %c0_i32 = arith.constant 0 : i32
    %c0_i32_0 = arith.constant 0 : i32
    %c0_i32_1 = arith.constant 0 : i32
    return %c0_i32, %c0_i32_0 : i32, i32
  }
  func.func @transform_4(%arg0: i32) -> (i32, i32) {
    %c0_i32 = arith.constant 0 : i32
    %c0_i32_0 = arith.constant 0 : i32
    %c0_i32_1 = arith.constant 0 : i32
    return %c0_i32, %c0_i32_0 : i32, i32
  }
  func.func @transform_5(%arg0: i32) -> (i32, i32) {
    %c0_i32 = arith.constant 0 : i32
    %c0_i32_0 = arith.constant 0 : i32
    %c0_i32_1 = arith.constant 0 : i32
    return %c0_i32, %c0_i32_0 : i32, i32
  }
  func.func @transform_6(%arg0: i32) -> (i32, i32) {
    %c0_i32 = arith.constant 0 : i32
    %c0_i32_0 = arith.constant 0 : i32
    %c0_i32_1 = arith.constant 0 : i32
    return %c0_i32, %c0_i32_0 : i32, i32
  }
  func.func @transform_7(%arg0: i32) -> (i32, i32) {
    %c0_i32 = arith.constant 0 : i32
    %c0_i32_0 = arith.constant 0 : i32
    return %arg0, %c0_i32 : i32, i32
  }
}

</mosaic_0001>

<bundles_post_ra>
// kernel: tpu_custom_call.1
= control target key start
LH: loop header
LB: loop body
LE: loop exit
PB: predicated region body
PF: predicated region fallthrough
CT: control target
= control target key end

     0   :  { %12 = vsyncpa [#allocation3], 0  ;;  %s488_s0 = inlined_call_operand.hbm [shape: f32[8,128], index: 0, kind: input, shape index: {}]   ;;  %s489_s1 = inlined_call_operand.hbm [shape: f32[128,128], index: 1, kind: input, shape index: {}]   ;;  %s490_s2 = inlined_call_operand.hbm [shape: f32[2,128,128], index: 2, kind: input, shape index: {}]   ;;  %s491_s3 = inlined_call_operand.hbm [shape: f32[128,128], index: 3, kind: input, shape index: {}]   ;;  %s492_s4 = inlined_call_operand.vmem [shape: f32[1,128], index: 4, kind: input, shape index: {}]   ;;  %s493_s5 = inlined_call_operand.vmem [shape: f32[2,128], index: 5, kind: input, shape index: {}]   ;;  %s494_s6 = inlined_call_operand.vmem [shape: f32[1,128], index: 6, kind: input, shape index: {}]   ;;  %s495_s7 = inlined_call_operand.hbm [shape: f32[8,128], index: 7, kind: output, shape index: {}]  }
   0x1   :  { %13 = vsyncpa [#allocation6], 0 }
   0x2   :  { %14 = vsyncpa [#allocation9], 0  ;;  %s31_s26 = sshll.u32 %s489_s1, 4  ;;  %s32_s26 = int_to_ptr.hbm [resolvable:$true] %s31_s26 }
   0x3   :  { %15 = vsyncpa [#allocation4], 0  ;;  %s414_s27 = smov [#allocation5]   ;;  %s21_s8 = sshll.u32 %s488_s0, 4  ;;  %s22_s8 = int_to_ptr.hbm [resolvable:$true] %s21_s8 }
   0x4   :  { %s33_s28 = sshll.u32 %s414_s27, 4  ;;  %s415_s9 = smov 128   ;;  %s34_s28 = int_to_ptr.vmem [resolvable:$true] %s33_s28 }
   0x5   :  { %s416_s10 = smov 8   ;;  %s417_s11 = smov [#allocation2]  }
   0x6   :  { %39 = dma.hbm_to_vmem [thread:$0]  %s32_s26, 2048, %s34_s28, [#allocation6], %s415_s9, %s415_s9, %s416_s10  }
   0x7   :  { %s23_s12 = sshll.u32 %s417_s11, 4  ;;  %s44_s15 = sshll.u32 %s490_s2, 4  ;;  %s24_s12 = int_to_ptr.vmem [resolvable:$true] %s23_s12  ;;  %s45_s15 = int_to_ptr.hbm [resolvable:$true] %s44_s15 }
   0x8   :  { %26 = dma.hbm_to_vmem [thread:$0]  %s22_s8, 128, %s24_s12, [#allocation3]  }
   0x9   :  { %s57_s17 = sshll.u32 %s491_s3, 4  ;;  %s418_s18 = smov [#allocation7]   ;;  %s58_s17 = int_to_ptr.hbm [resolvable:$true] %s57_s17 }
   0xa   :  { %s46_s19 = sshll.u32 %s418_s18, 4  ;;  %s419_s0 = smov [#allocation8]   ;;  %s47_s19 = int_to_ptr.vmem [resolvable:$true] %s46_s19 }
   0xb   :  { %52 = dma.hbm_to_vmem [thread:$0]  %s45_s15, 4096, %s47_s19, [#allocation6], %s415_s9, %s415_s9, %s416_s10  }
   0xc   :  { %s59_s20 = sshll.u32 %s419_s0, 4  ;;  %s60_s20 = int_to_ptr.vmem [resolvable:$true] %s59_s20 }
   0xd   :  { %65 = dma.hbm_to_vmem [thread:$0]  %s58_s17, 2048, %s60_s20, [#allocation9], %s415_s9, %s415_s9, %s416_s10  }
   0xe   :  { %406 = dma.done.wait [#allocation3], 128  }
   0xf   :  { %407 = vsyncadd [#allocation3], 4294967168 }
  0x10   :  { %408 = dma.done.wait [#allocation6], 6144  }
  0x11   :  { %409 = vsyncadd [#allocation6], 4294961152 }
  0x12   :  { %410 = dma.done.wait [#allocation9], 2048  }
  0x13   :  { %411 = vsyncadd [#allocation9], 4294965248  ;;  %v104_v0 = vld [vmem:[#allocation5 + $0x78] sm:$0xff]  ;;  %v103_v1 = vld [vmem:[#allocation5 + $0x70] sm:$0xff]  ;;  %s420_s26 = smov [#allocation10]   ;;  %s257_s30 = sshll.u32 %s495_s7, 4  ;;  %s258_s30 = int_to_ptr.hbm [resolvable:$true] %s257_s30 }
  0x14   :  { %109 = vmatpush.msra.mxu0 %v104_v0  ;;  %v102_v2 = vld [vmem:[#allocation5 + $0x68] sm:$0xff]  ;;  %v101_v3 = vld [vmem:[#allocation5 + $0x60] sm:$0xff]  ;;  %v145_v4 = vld [vmem:[#allocation7 + $0x78] sm:$0xff]  ;;  %s255_s27 = sshll.u32 %s420_s26, 4  ;;  %s256_s27 = int_to_ptr.vmem [resolvable:$true] %s255_s27 }
  0x15   :  { %v100_v5 = vld [vmem:[#allocation5 + $0x58] sm:$0xff]  ;;  %148 = vmatpush.msra.mxu1 %v145_v4  ;;  %v144_v6 = vld [vmem:[#allocation7 + $0x70] sm:$0xff]  ;;  %v143_v7 = vld [vmem:[#allocation7 + $0x68] sm:$0xff] }
  0x16   :  { %110 = vmatpush.msra.mxu0 %v103_v1  ;;  %v99_v8 = vld [vmem:[#allocation5 + $0x50] sm:$0xff]  ;;  %v98_v9 = vld [vmem:[#allocation5 + $0x48] sm:$0xff]  ;;  %v142_v10 = vld [vmem:[#allocation7 + $0x60] sm:$0xff] }
  0x17   :  { %149 = vmatpush.msra.mxu1 %v144_v6  ;;  %v141_v11 = vld [vmem:[#allocation7 + $0x58] sm:$0xff]  ;;  %v97_v12 = vld [vmem:[#allocation5 + $0x40] sm:$0xff]  ;;  %v140_v13 = vld [vmem:[#allocation7 + $0x50] sm:$0xff] }
  0x18   :  { %111 = vmatpush.msra.mxu0 %v102_v2  ;;  %v96_v14 = vld [vmem:[#allocation5 + $0x38] sm:$0xff]  ;;  %v139_v15 = vld [vmem:[#allocation7 + $0x48] sm:$0xff]  ;;  %v95_v16 = vld [vmem:[#allocation5 + $0x30] sm:$0xff] }
  0x19   :  { %150 = vmatpush.msra.mxu1 %v143_v7  ;;  %v138_v17 = vld [vmem:[#allocation7 + $0x40] sm:$0xff]  ;;  %v94_v18 = vld [vmem:[#allocation5 + $0x28] sm:$0xff]  ;;  %v137_v19 = vld [vmem:[#allocation7 + $0x38] sm:$0xff] }
  0x1a   :  { %112 = vmatpush.msra.mxu0 %v101_v3  ;;  %v93_v20 = vld [vmem:[#allocation5 + $0x20] sm:$0xff]  ;;  %v136_v21 = vld [vmem:[#allocation7 + $0x30] sm:$0xff]  ;;  %v92_v22 = vld [vmem:[#allocation5 + $0x18] sm:$0xff] }
  0x1b   :  { %151 = vmatpush.msra.mxu1 %v142_v10  ;;  %v135_v23 = vld [vmem:[#allocation7 + $0x28] sm:$0xff]  ;;  %v91_v24 = vld [vmem:[#allocation5 + $0x10] sm:$0xff]  ;;  %v89_v26 = vld [vmem:[#allocation5] sm:$0xff] }
  0x1c   :  { %113 = vmatpush.msra.mxu0 %v100_v5  ;;  %v90_v25 = vld [vmem:[#allocation5 + $0x8] sm:$0xff]  ;;  %v88_v27 = vld [vmem:[#allocation2] sm:$0xff]  ;;  %v134_v28 = vld [vmem:[#allocation7 + $0x20] sm:$0xff] }
  0x1d   :  { %152 = vmatpush.msra.mxu1 %v141_v11  ;;  %v133_v29 = vld [vmem:[#allocation7 + $0x18] sm:$0xff]  ;;  %v132_v30 = vld [vmem:[#allocation7 + $0x10] sm:$0xff]  ;;  %v131_v31 = vld [vmem:[#allocation7 + $0x8] sm:$0xff] }
  0x1e   :  { %114 = vmatpush.msra.mxu0 %v99_v8  ;;  %v130_v32 = vld [vmem:[#allocation7] sm:$0xff]  ;;  %v185_v33 = vld [vmem:[#allocation7 + $0xf8] sm:$0xff]  ;;  %v184_v34 = vld [vmem:[#allocation7 + $0xf0] sm:$0xff] }
  0x1f   :  { %153 = vmatpush.msra.mxu1 %v140_v13  ;;  %188 = vmatpush.msra.mxu2 %v185_v33  ;;  %v183_v35 = vld [vmem:[#allocation7 + $0xe8] sm:$0xff]  ;;  %v182_v36 = vld [vmem:[#allocation7 + $0xe0] sm:$0xff]  ;;  %v181_v37 = vld [vmem:[#allocation7 + $0xd8] sm:$0xff] }
  0x20   :  { %115 = vmatpush.msra.mxu0 %v98_v9  ;;  %v180_v38 = vld [vmem:[#allocation7 + $0xd0] sm:$0xff]  ;;  %v179_v39 = vld [vmem:[#allocation7 + $0xc8] sm:$0xff]  ;;  %v178_v40 = vld [vmem:[#allocation7 + $0xc0] sm:$0xff] }
  0x21   :  { %154 = vmatpush.msra.mxu1 %v139_v15  ;;  %189 = vmatpush.msra.mxu2 %v184_v34  ;;  %v177_v41 = vld [vmem:[#allocation7 + $0xb8] sm:$0xff]  ;;  %v176_v42 = vld [vmem:[#allocation7 + $0xb0] sm:$0xff]  ;;  %v175_v43 = vld [vmem:[#allocation7 + $0xa8] sm:$0xff] }
  0x22   :  { %116 = vmatpush.msra.mxu0 %v97_v12  ;;  %v276_v44 = vld [vmem:[%s492_s4] ss:$0 sm:$0xff]  ;;  %v174_v48 = vld [vmem:[#allocation7 + $0xa0] sm:$0xff]  ;;  %v172_v50 = vld [vmem:[#allocation7 + $0x90] sm:$0xff] }
  0x23   :  { %155 = vmatpush.msra.mxu1 %v138_v17  ;;  %190 = vmatpush.msra.mxu2 %v183_v35  ;;  %v173_v49 = vld [vmem:[#allocation7 + $0x98] sm:$0xff]  ;;  %v171_v51 = vld [vmem:[#allocation7 + $0x88] sm:$0xff]  ;;  %v170_v52 = vld [vmem:[#allocation7 + $0x80] sm:$0xff] }
  0x24   :  { %117 = vmatpush.msra.mxu0 %v96_v14  ;;  %v224_v53 = vld [vmem:[#allocation8 + $0x78] sm:$0xff]  ;;  %v223_v54 = vld [vmem:[#allocation8 + $0x70] sm:$0xff]  ;;  %v222_v55 = vld [vmem:[#allocation8 + $0x68] sm:$0xff] }
  0x25   :  { %156 = vmatpush.msra.mxu1 %v137_v19  ;;  %191 = vmatpush.msra.mxu2 %v182_v36  ;;  %v221_v56 = vld [vmem:[#allocation8 + $0x60] sm:$0xff]  ;;  %v220_v57 = vld [vmem:[#allocation8 + $0x58] sm:$0xff]  ;;  %v219_v58 = vld [vmem:[#allocation8 + $0x50] sm:$0xff] }
  0x26   :  { %118 = vmatpush.msra.mxu0 %v95_v16  ;;  %229 = vmatpush.msra.mxu3 %v224_v53  ;;  %v218_v59 = vld [vmem:[#allocation8 + $0x48] sm:$0xff]  ;;  %v217_v60 = vld [vmem:[#allocation8 + $0x40] sm:$0xff]  ;;  %v216_v61 = vld [vmem:[#allocation8 + $0x38] sm:$0xff] }
  0x27   :  { %157 = vmatpush.msra.mxu1 %v136_v21  ;;  %192 = vmatpush.msra.mxu2 %v181_v37  ;;  %v215_v62 = vld [vmem:[#allocation8 + $0x30] sm:$0xff]  ;;  %v214_v63 = vld [vmem:[#allocation8 + $0x28] sm:$0xff]  ;;  %v277_v0 = vld [vmem:[%s493_s5] ss:$0 sm:$0xff] }
  0x28   :  { %119 = vmatpush.msra.mxu0 %v94_v18  ;;  %230 = vmatpush.msra.mxu3 %v223_v54  ;;  %v213_v4 = vld [vmem:[#allocation8 + $0x20] sm:$0xff]  ;;  %v212_v5 = vld [vmem:[#allocation8 + $0x18] sm:$0xff]  ;;  %v211_v6 = vld [vmem:[#allocation8 + $0x10] sm:$0xff] }
  0x29   :  { %158 = vmatpush.msra.mxu1 %v135_v23  ;;  %193 = vmatpush.msra.mxu2 %v180_v38  ;;  %v210_v7 = vld [vmem:[#allocation8 + $0x8] sm:$0xff]  ;;  %v209_v8 = vld [vmem:[#allocation8] sm:$0xff]  ;;  %v278_v9 = vld [vmem:[%s493_s5 + $0x1] ss:$0 sm:$0xff] }
  0x2a   :  { %120 = vmatpush.msra.mxu0 %v93_v20  ;;  %231 = vmatpush.msra.mxu3 %v222_v55  ;;  %v279_v13 = vld [vmem:[%s494_s6] ss:$0 sm:$0xff] }
  0x2b   :  { %159 = vmatpush.msra.mxu1 %v134_v28  ;;  %194 = vmatpush.msra.mxu2 %v179_v39 }
  0x2c   :  { %121 = vmatpush.msra.mxu0 %v92_v22  ;;  %232 = vmatpush.msra.mxu3 %v221_v56 }
  0x2d   :  { %160 = vmatpush.msra.mxu1 %v133_v29  ;;  %195 = vmatpush.msra.mxu2 %v178_v40 }
  0x2e   :  { %122 = vmatpush.msra.mxu0 %v91_v24  ;;  %233 = vmatpush.msra.mxu3 %v220_v57 }
  0x2f   :  { %161 = vmatpush.msra.mxu1 %v132_v30  ;;  %196 = vmatpush.msra.mxu2 %v177_v41 }
  0x30   :  { %123 = vmatpush.msra.mxu0 %v90_v25  ;;  %234 = vmatpush.msra.mxu3 %v219_v58 }
  0x31   :  { %162 = vmatpush.msra.mxu1 %v131_v31  ;;  %197 = vmatpush.msra.mxu2 %v176_v42 }
  0x32   :  { %124 = vmatpush.msra.mxu0 %v89_v26  ;;  %235 = vmatpush.msra.mxu3 %v218_v59 }
  0x33   :  { %125 = vmatmul.f32.vlgmr.msra.gmra.mxu0 %v88_v27  ;;  %163 = vmatpush.msra.mxu1 %v130_v32 }
  0x34   :  { %198 = vmatpush.msra.mxu2 %v175_v43  ;;  %236 = vmatpush.msra.mxu3 %v217_v60 }
  0x36   :  { %199 = vmatpush.msra.mxu2 %v174_v48  ;;  %237 = vmatpush.msra.mxu3 %v216_v61 }
  0x38   :  { %200 = vmatpush.msra.mxu2 %v173_v49  ;;  %238 = vmatpush.msra.mxu3 %v215_v62 }
  0x3a   :  { %201 = vmatpush.msra.mxu2 %v172_v50  ;;  %239 = vmatpush.msra.mxu3 %v214_v63 }
  0x3c   :  { %202 = vmatpush.msra.mxu2 %v171_v51  ;;  %240 = vmatpush.msra.mxu3 %v213_v4 }
  0x3e   :  { %203 = vmatpush.msra.mxu2 %v170_v52  ;;  %241 = vmatpush.msra.mxu3 %v212_v5 }
  0x40   :  { %242 = vmatpush.msra.mxu3 %v211_v6 }
  0x42   :  { %243 = vmatpush.msra.mxu3 %v210_v7 }
  0x44   :  { %244 = vmatpush.msra.mxu3 %v209_v8 }
  0xb0   :  { %v126_v45 = vpop.f32.mrf.mxu0 }
  0xb1   :  { %v127_v46 = vadd.f32 %v276_v44, %v126_v45 }
  0xb3   :  { %280 = vtanh.f32 %v127_v46 }
  0xb9   :  { %v281_v47 = vpop.eup %280 }
  0xba   :  { %164 = vmatmul.f32.vlgmr.msra.gmra.mxu1 %v281_v47 }
 0x137   :  { %v165_v1 = vpop.f32.mrf.mxu1 }
 0x138   :  { %v166_v2 = vadd.f32 %v277_v0, %v165_v1 }
 0x13a   :  { %282 = vtanh.f32 %v166_v2 }
 0x140   :  { %v283_v3 = vpop.eup %282 }
 0x141   :  { %204 = vmatmul.f32.vlgmr.msra.gmra.mxu2 %v283_v3 }
 0x1c4   :  { %v205_v10 = vpop.f32.mrf.mxu2 }
 0x1c5   :  { %v206_v11 = vadd.f32 %v278_v9, %v205_v10 }
 0x1c7   :  { %284 = vtanh.f32 %v206_v11 }
 0x1cd   :  { %v285_v12 = vpop.eup %284 }
 0x1ce   :  { %245 = vmatmul.f32.vlgmr.msra.gmra.mxu3 %v285_v12 }
 0x251   :  { %v246_v14 = vpop.f32.mrf.mxu3 }
 0x252   :  { %v247_v15 = vadd.f32 %v279_v13, %v246_v14 }
 0x254   :  { %249 = vst [vmem:[#allocation10] sm:$0xff] %v247_v15 }
 0x255   :  { %260 = dma.vmem_to_hbm [thread:$0]  %s256_s27, 128, %s258_s30, [#allocation4]  }
 0x256   :  { %412 = dma.done.wait [#allocation4], 128  }
 0x257   :  { %413 = vsyncadd [#allocation4], 4294967168 }
 0x258   :  { %265 = vsyncpa [#allocation3], 1 }
 0x259   :  { %266 = vsyncpa [#allocation6], 1 }
 0x25a   :  { %267 = vsyncpa [#allocation9], 1 }
 0x25b   :  { %268 = vsyncpa [#allocation4], 1 }

</bundles_post_ra>
